<compile_context>
chip_gen: v7x
topology: tpu7x:2x2x1
jax: 0.10.0
libtpu: 0.0.40
codegen_flags: <defaults>
</compile_context>

<pallas_src>
import functools

import jax
import jax.numpy as jnp
from jax.experimental import pallas as pl
from jax.experimental.pallas import tpu as pltpu

LANES = 128
SUBLANES = 8
SLAB_ROWS = 512  # inner-loop slab; multiple of 32 so it satisfies all dtype packings


def _round_up(x, m):
    return ((x + m - 1) // m) * m


def _mse_sum_kernel(fs_ref, ft_ref, out_ref, *, total_rows, block_rows, slab_rows,
                    blocks_per_split, first_masked_block, needs_mask):
    p = pl.program_id(0)  # parallel stripe (TensorCore on v7x)
    j = pl.program_id(1)  # reduction axis within the stripe
    g = p * blocks_per_split + j  # logical (unclamped) global block index

    @pl.when(j == 0)
    def _():
        out_ref[...] = jnp.zeros_like(out_ref)

    n_slabs = block_rows // slab_rows

    def accumulate(masked):
        def body(s, carry):
            r0 = pl.multiple_of(s * slab_rows, slab_rows)
            fs = fs_ref[pl.ds(r0, slab_rows), :].astype(jnp.float32)
            ft = ft_ref[pl.ds(r0, slab_rows), :].astype(jnp.float32)
            d = fs - ft
            sq = d * d
            if masked:
                # OOB rows may hold garbage (possibly Inf/NaN); jnp.where is a select,
                # so masked lanes contribute exactly 0 (do NOT replace with a multiply).
                row = (jax.lax.broadcasted_iota(jnp.int32, sq.shape, 0)
                       + g * block_rows + r0)
                sq = jnp.where(row < total_rows, sq, jnp.float32(0.0))
            # Fold (slab_rows,128) -> (slab_rows//8, 8, 128): pure VPU accumulation into
            # the resident (8,128) output slab; no per-step XLU reduce.
            out_ref[...] += jnp.sum(
                sq.reshape(slab_rows // SUBLANES, SUBLANES, LANES), axis=0)
            return carry

        jax.lax.fori_loop(0, n_slabs, body, 0)

    if needs_mask:
        # Keep the mask (iota + add + compare + select) off the hot path: only the final
        # real block and any padded blocks pay for it.
        @pl.when(g < first_masked_block)
        def _():
            accumulate(False)

        @pl.when(g >= first_masked_block)
        def _():
            accumulate(True)
    else:
        accumulate(False)


def hint_loss(f_s, f_t, *, tile_rows=None):
    """MSE loss between student and teacher features (any matching shape)."""
    assert f_s.shape == f_t.shape, "FitNet hint loss requires matching feature shapes"
    n_elems = f_s.size
    itemsize = jnp.dtype(f_s.dtype).itemsize
    inv_n = 1.0 / float(n_elems)

    flat_s = f_s.reshape(-1)
    flat_t = f_t.reshape(-1)

    # Ragged lane tail (< 128 elems): handled in plain JAX.
    # TODO(synk): when n_elems % 128 != 0 the head slice below may be materialized by XLA
    # as a full extra copy of each input; folding the <128-elem tail into the kernel via a
    # separately staged DMA would avoid that extra HBM pass.
    rows = n_elems // LANES
    head = rows * LANES
    rem = n_elems - head
    if rem:
        ts = flat_s[head:].astype(jnp.float32)
        tt = flat_t[head:].astype(jnp.float32)
        tail_sum = jnp.sum((ts - tt) ** 2)
        flat_s = flat_s[:head]
        flat_t = flat_t[:head]
    else:
        tail_sum = jnp.float32(0.0)

    if rows == 0:
        # Tiny input (< 128 elements): nothing for the kernel to do.
        return (tail_sum * jnp.float32(inv_n)).astype(f_s.dtype)

    # Minimum sublane multiple for the native tile of this dtype (f32: 8, bf16: 16, 8-bit: 32).
    sub_m = {4: SUBLANES, 2: 2 * SUBLANES, 1: 4 * SUBLANES}.get(itemsize, SUBLANES)
    if tile_rows is None:
        # ~4 MiB per input block regardless of dtype (16 MiB total double-buffered).
        tile_rows = 8192 * (4 // itemsize)
    tr = min(tile_rows, _round_up(rows, sub_m))
    tr = _round_up(tr, sub_m)
    if tr >= SLAB_ROWS:
        tr = _round_up(tr, SLAB_ROWS)
        slab = SLAB_ROWS
    else:
        slab = tr

    n_blocks = pl.cdiv(rows, tr)
    # Leading parallel axis: sharded across both TensorCores on v7x; a no-op loop elsewhere.
    n_split = 2 if n_blocks >= 2 else 1
    bps = pl.cdiv(n_blocks, n_split)
    padded_blocks = n_split * bps
    first_masked_block = n_blocks if (rows % tr) == 0 else n_blocks - 1
    needs_mask = first_masked_block < padded_blocks

    def in_map(p, j):
        g = p * bps + j
        if padded_blocks != n_blocks:
            # Padded logical blocks re-read the last real block (their rows are fully
            # masked in-kernel), keeping the generated DMAs in bounds.
            g = jnp.minimum(g, n_blocks - 1)
        return (g, 0)

    fs2d = flat_s.reshape(rows, LANES)
    ft2d = flat_t.reshape(rows, LANES)

    kernel = functools.partial(
        _mse_sum_kernel,
        total_rows=rows,
        block_rows=tr,
        slab_rows=slab,
        blocks_per_split=bps,
        first_masked_block=first_masked_block,
        needs_mask=needs_mask,
    )

    # 2 inputs x 2 pipeline buffers, plus generous headroom for slab temporaries.
    inbuf_bytes = 2 * 2 * tr * LANES * itemsize
    vmem_limit = min(max(inbuf_bytes + (16 << 20), 32 << 20), 64 << 20)

    partials = pl.pallas_call(
        kernel,
        out_shape=jax.ShapeDtypeStruct((n_split * SUBLANES, LANES), jnp.float32),
        grid_spec=pltpu.PrefetchScalarGridSpec(
            num_scalar_prefetch=0,
            grid=(n_split, bps),
            in_specs=[
                pl.BlockSpec((tr, LANES), in_map),
                pl.BlockSpec((tr, LANES), in_map),
            ],
            out_specs=pl.BlockSpec((SUBLANES, LANES), lambda p, j: (p, 0)),
        ),
        compiler_params=pltpu.CompilerParams(
            dimension_semantics=("parallel", "arbitrary"),
            vmem_limit_bytes=int(vmem_limit),
        ),
        cost_estimate=pl.CostEstimate(
            flops=3 * head,
            transcendentals=0,
            bytes_accessed=2 * head * itemsize + n_split * SUBLANES * LANES * 4,
        ),
    )(fs2d, ft2d)

    loss = (jnp.sum(partials) + tail_sum) * jnp.float32(inv_n)
    return loss.astype(f_s.dtype)


if __name__ == "__main__":
    key = jax.random.PRNGKey(0)
    k1, k2 = jax.random.split(key)
    # Student / teacher feature maps, NCHW, small shapes.
    f_s = jax.random.normal(k1, (2, 4, 16, 16), dtype=jnp.float32)
    f_t = jax.random.normal(k2, (2, 4, 16, 16), dtype=jnp.float32)

    loss = hint_loss(f_s, f_t)
    loss = jax.block_until_ready(loss)

    # Reference check against plain JAX (same semantics as nn.MSELoss default 'mean').
    ref = jnp.mean((f_s - f_t) ** 2)
    assert jnp.allclose(loss, ref, rtol=1e-6, atol=1e-6), (loss, ref)

    print("KERNEL_OK")
</pallas_src>

<mosaic_0001>
module attributes {stable_mosaic.version = 11 : i64} {
  func.func @_mse_sum_kernel(%arg0: i32, %arg1: i32, %arg2: memref<16x128xf32, #tpu.memory_space<vmem>>, %arg3: memref<16x128xf32, #tpu.memory_space<vmem>>, %arg4: memref<8x128xf32, #tpu.memory_space<vmem>>) attributes {dimension_semantics = [#tpu.dimension_semantics<parallel>, #tpu.dimension_semantics<arbitrary>], iteration_bounds = array<i64: 1, 1>, scalar_prefetch = 0 : i64, scratch_operands = 0 : i64, tpu.core_type = #tpu.core_type<tc>, window_params = [{transform_indices = @transform_0, window_bounds = array<i64: 16, 128>}, {transform_indices = @transform_1, window_bounds = array<i64: 16, 128>}, {transform_indices = @transform_2, window_bounds = array<i64: 8, 128>}]} {
    %c0_i32 = arith.constant 0 : i32
    %0 = arith.cmpi eq, %arg1, %c0_i32 : i32
    %1 = arith.extui %0 : i1 to i32
    %c0_i32_0 = arith.constant 0 : i32
    %2 = arith.cmpi ne, %1, %c0_i32_0 : i32
    scf.if %2 {
      %cst_7 = arith.constant 0.000000e+00 : f32
      %16 = vector.broadcast %cst_7 : f32 to vector<8x128xf32>
      %c0_8 = arith.constant 0 : index
      %c0_9 = arith.constant 0 : index
      %17 = vector.load %arg4[%c0_8, %c0_9] : memref<8x128xf32, #tpu.memory_space<vmem>>, vector<8x128xf32>
      tpu.vector_store %arg4[%c0_8, %c0_9], %16 {strides = array<i32>} : memref<8x128xf32, #tpu.memory_space<vmem>>, vector<8x128xf32>,
    } else {
    }
    %c0_i32_1 = arith.constant 0 : i32
    %c16_i32 = arith.constant 16 : i32
    %3 = arith.muli %c0_i32_1, %c16_i32 : i32
    %4 = tpu.assume_multiple %3, 16 : i32
    %5 = arith.index_cast %4 : i32 to index
    %c0 = arith.constant 0 : index
    %6 = vector.load %arg2[%5, %c0] : memref<16x128xf32, #tpu.memory_space<vmem>>, vector<16x128xf32>
    %7 = arith.index_cast %4 : i32 to index
    %c0_2 = arith.constant 0 : index
    %8 = vector.load %arg3[%7, %c0_2] : memref<16x128xf32, #tpu.memory_space<vmem>>, vector<16x128xf32>
    %9 = arith.subf %6, %8 : vector<16x128xf32>
    %10 = arith.mulf %9, %9 : vector<16x128xf32>
    %c0_3 = arith.constant 0 : index
    %c0_4 = arith.constant 0 : index
    %11 = vector.load %arg4[%c0_3, %c0_4] : memref<8x128xf32, #tpu.memory_space<vmem>>, vector<8x128xf32>
    %12 = vector.shape_cast %10 : vector<16x128xf32> to vector<2x8x128xf32>
    %cst = arith.constant dense<0.000000e+00> : vector<8x128xf32>
    %13 = vector.multi_reduction <add>, %12, %cst [0] : vector<2x8x128xf32> to vector<8x128xf32>
    %14 = arith.addf %11, %13 : vector<8x128xf32>
    %c0_5 = arith.constant 0 : index
    %c0_6 = arith.constant 0 : index
    %15 = vector.load %arg4[%c0_5, %c0_6] : memref<8x128xf32, #tpu.memory_space<vmem>>, vector<8x128xf32>
    tpu.vector_store %arg4[%c0_5, %c0_6], %14 {strides = array<i32>} : memref<8x128xf32, #tpu.memory_space<vmem>>, vector<8x128xf32>,
    %c1_i32 = arith.constant 1 : i32
    return
  }
  func.func @transform_0(%arg0: i32, %arg1: i32) -> (i32, i32) {
    %c1_i32 = arith.constant 1 : i32
    %0 = arith.muli %arg0, %c1_i32 : i32
    %1 = arith.addi %0, %arg1 : i32
    %c0_i32 = arith.constant 0 : i32
    %c0_i32_0 = arith.constant 0 : i32
    return %1, %c0_i32 : i32, i32
  }
  func.func @transform_1(%arg0: i32, %arg1: i32) -> (i32, i32) {
    %c1_i32 = arith.constant 1 : i32
    %0 = arith.muli %arg0, %c1_i32 : i32
    %1 = arith.addi %0, %arg1 : i32
    %c0_i32 = arith.constant 0 : i32
    %c0_i32_0 = arith.constant 0 : i32
    return %1, %c0_i32 : i32, i32
  }
  func.func @transform_2(%arg0: i32, %arg1: i32) -> (i32, i32) {
    %c0_i32 = arith.constant 0 : i32
    %c0_i32_0 = arith.constant 0 : i32
    return %arg0, %c0_i32 : i32, i32
  }
}

</mosaic_0001>

<bundles_post_ra>
// kernel: tpu_custom_call.1
= control target key start
LH: loop header
LB: loop body
LE: loop exit
PB: predicated region body
PF: predicated region fallthrough
CT: control target
= control target key end

     0   :  { %7 = vsyncpa [#allocation3], 0  ;;  %s219_s0 = inlined_call_operand.hbm [shape: f32[16,128], index: 0, kind: input, shape index: {}]   ;;  %s220_s1 = inlined_call_operand.hbm [shape: f32[16,128], index: 1, kind: input, shape index: {}]   ;;  %s221_s2 = inlined_call_operand.hbm [shape: f32[8,128], index: 2, kind: output, shape index: {}]  }
   0x1   :  { %8 = vsyncpa [#allocation6], 0 }
   0x2   :  { %9 = vsyncpa [#allocation4], 0  ;;  %s163_s9 = smov [#allocation2]   ;;  %s91_s13 = scalar_lea.hbm %s219_s0, 256 }
   0x3   :  { %s19_s10 = sshll.u32 %s163_s9, 4  ;;  %p92_p0 = scmp.ne.s32.totalorder %s219_s0, %s91_s13  ;;  %s20_s10 = int_to_ptr.vmem [resolvable:$true] %s19_s10 }
   0x4   :  { %p95_p1 = scmp.lt.u32.totalorder %s91_s13, %s219_s0 }
   0x6   :  { %p97_p2 = pnand %p95_p1, %p92_p0 }
   0x8   :  { %100 = shalt.err (!%p97_p2)
}
   0x9   :  { %s101_s18 = scalar_lea.vmem %s20_s10, 256  ;;  %p106_p4 = scmp.lt.s32.totalorder %s20_s10, %s20_s10 }
   0xa   :  { %p102_p3 = scmp.ne.s32.totalorder %s20_s10, %s101_s18  ;;  %p107_p5 = scmp.lt.s32.totalorder %s101_s18, %s101_s18 }
   0xc   :  { %p108_p6 = por %p107_p5, %p106_p4 }
   0xe   :  { %p109_p7 = pnand %p108_p6, %p102_p3 }
  0x10   :  { %112 = shalt.err (!%p109_p7)
}
  0x11   :  { %s164_s19 = smov 128   ;;  %s165_s20 = smov 8  }
  0x12   :  { %25 = dma.hbm_to_vmem [thread:$0]  %s219_s0, 256, %s20_s10, [#allocation3], %s164_s19, %s164_s19, %s165_s20  }
  0x13   :  { %s166_s23 = smov [#allocation5]   ;;  %s113_s27 = scalar_lea.hbm %s220_s1, 256 }
  0x14   :  { %s35_s24 = sshll.u32 %s166_s23, 4  ;;  %p114_p8 = scmp.ne.s32.totalorder %s220_s1, %s113_s27  ;;  %s36_s24 = int_to_ptr.vmem [resolvable:$true] %s35_s24 }
  0x15   :  { %p117_p9 = scmp.lt.u32.totalorder %s113_s27, %s220_s1 }
  0x17   :  { %p119_p10 = pnand %p117_p9, %p114_p8 }
  0x19   :  { %122 = shalt.err (!%p119_p10)
}
  0x1a   :  { %s123_s4 = scalar_lea.vmem %s36_s24, 256  ;;  %p128_p12 = scmp.lt.s32.totalorder %s36_s24, %s36_s24 }
  0x1b   :  { %p124_p11 = scmp.ne.s32.totalorder %s36_s24, %s123_s4  ;;  %p129_p13 = scmp.lt.s32.totalorder %s123_s4, %s123_s4 }
  0x1d   :  { %p130_p0 = por %p129_p13, %p128_p12 }
  0x1f   :  { %p131_p1 = pnand %p130_p0, %p124_p11 }
  0x21   :  { %134 = shalt.err (!%p131_p1)
}
  0x22   :  { %41 = dma.hbm_to_vmem [thread:$0]  %s220_s1, 256, %s36_s24, [#allocation6], %s164_s19, %s164_s19, %s165_s20  }
  0x23   :  { %157 = dma.done.wait [#allocation3], 256  }
  0x24   :  { %158 = vsyncadd [#allocation3], 4294967040 }
  0x25   :  { %159 = dma.done.wait [#allocation6], 256  }
  0x26   :  { %160 = vsyncadd [#allocation6], 4294967040  ;;  %v57_v0 = vld [vmem:[#allocation2] sm:$0xff]  ;;  %v58_v1 = vld [vmem:[#allocation2 + $0x8] sm:$0xff]  ;;  %s167_s6 = smov [#allocation7]  }
  0x27   :  { %v59_v2 = vld [vmem:[#allocation5] sm:$0xff]  ;;  %v60_v3 = vld [vmem:[#allocation5 + $0x8] sm:$0xff]  ;;  %s75_s7 = sshll.u32 %s167_s6, 4  ;;  %s76_s7 = int_to_ptr.vmem [resolvable:$true] %s75_s7 }
  0x28   :  { %v61_v4 = vsub.f32 %v57_v0, %v59_v2  ;;  %v62_v5 = vsub.f32 %v58_v1, %v60_v3  ;;  %s135_s8 = scalar_lea.vmem %s76_s7, 128  ;;  %p140_p3 = scmp.lt.s32.totalorder %s76_s7, %s76_s7 }
  0x29   :  { %p136_p2 = scmp.ne.s32.totalorder %s76_s7, %s135_s8  ;;  %p141_p4 = scmp.lt.s32.totalorder %s135_s8, %s135_s8 }
  0x2a   :  { %v63_v6 = vmul.f32 %v61_v4, %v61_v4  ;;  %v64_v7 = vmul.f32 %v62_v5, %v62_v5 }
  0x2b   :  { %p142_p5 = por %p141_p4, %p140_p3 }
  0x2c   :  { %v66_v8 = vadd.f32 %v64_v7, %v63_v6 }
  0x2d   :  { %p143_p6 = pnand %p142_p5, %p136_p2 }
  0x2e   :  { %68 = vst [vmem:[#allocation7] sm:$0xff] %v66_v8 }
  0x2f   :  { %146 = shalt.err (!%p143_p6)
}
  0x30   :  { %s147_s10 = scalar_lea.hbm %s221_s2, 128 }
  0x31   :  { %p148_p7 = scmp.ne.s32.totalorder %s221_s2, %s147_s10  ;;  %p151_p8 = scmp.lt.u32.totalorder %s147_s10, %s221_s2 }
  0x33   :  { %p153_p9 = pnand %p151_p8, %p148_p7 }
  0x35   :  { %156 = shalt.err (!%p153_p9)
}
  0x36   :  { %78 = dma.vmem_to_hbm [thread:$0]  %s76_s7, 128, %s221_s2, [#allocation4]  }
  0x37   :  { %161 = dma.done.wait [#allocation4], 128  }
  0x38   :  { %162 = vsyncadd [#allocation4], 4294967168 }
  0x39   :  { %82 = vsyncpa [#allocation3], 1 }
  0x3a   :  { %83 = vsyncpa [#allocation6], 1 }
  0x3b   :  { %84 = vsyncpa [#allocation4], 1 }

</bundles_post_ra>
